<compile_context>
chip_gen: v7x
topology: tpu7x:2x2x1
jax: 0.10.0
libtpu: 0.0.40
codegen_flags: <defaults>
</compile_context>

<pallas_src>
import functools

import jax
import jax.numpy as jnp
from jax.experimental import pallas as pl
from jax.experimental.pallas import tpu as pltpu

IN_FEATURES = 3
HIDDEN = 128
OUT_FEATURES = 2


def mlp_kernel(x_ref, w1_ref, b1_ref, w2_ref, b2_ref, w3_ref, b3_ref, o_ref):
    # x: (TB, 3) f32; weights resident in VMEM across the whole grid.
    x = x_ref[...]
    w1 = w1_ref[...]                                           # (3, 128) f32

    # Layer 1 (K=3): three broadcast-FMAs on the VPU in f32 -- cheaper and more
    # precise than padding to a K=8 MXU matmul.
    h1 = (x[:, 0:1] * w1[0:1, :]
          + x[:, 1:2] * w1[1:2, :]
          + x[:, 2:3] * w1[2:3, :]
          + b1_ref[...])
    h1 = jnp.maximum(h1, 0.0)

    # Layer 2: 128x128 bf16 MXU matmul, f32 accumulation; bias/ReLU in f32.
    h2 = jnp.dot(h1.astype(jnp.bfloat16), w2_ref[...],
                 preferred_element_type=jnp.float32) + b2_ref[...]
    h2 = jnp.maximum(h2, 0.0)

    # Layer 3: (TB,128) @ (128,2), f32 accumulation; narrow-N store is masked
    # but negligible (kernel is HBM-writeback bound, not store-slot bound).
    h3 = jnp.dot(h2.astype(jnp.bfloat16), w3_ref[...],
                 preferred_element_type=jnp.float32) + b3_ref[...]
    o_ref[...] = h3.astype(o_ref.dtype)                        # (TB, 2)


def _round_up(n, m):
    return ((n + m - 1) // m) * m


@functools.partial(jax.jit, static_argnames=("block_b",))
def mlp_forward(x, kparams, block_b=2048):
    """x: (B, 3) float32; kparams: prepare_params() output (y = x @ W + b layout)."""
    w1, b1, w2, b2, w3, b3 = (kparams[k] for k in ("w1", "b1", "w2", "b2", "w3", "b3"))
    B = x.shape[0]

    # Batch tile: multiple of 8 (sublane-aligned), capped at block_b and at
    # ~B/2 so the grid has >=2 steps for moderate batches (both v7x TCs used).
    half = _round_up(max(1, -(-B // 2)), 8)
    tb = max(8, min(_round_up(block_b, 8), half))
    bp = _round_up(B, tb)

    # Pad only the ragged tail rows (no full-size zero copy).
    x_p = x if bp == B else jnp.pad(x, ((0, bp - B), (0, 0)))

    grid = (bp // tb,)

    # Weights/biases: full-array blocks with constant index_map -> VMEM-resident.
    def resident(arr):
        return pl.BlockSpec(arr.shape, lambda i, _nd=arr.ndim: (0,) * _nd)

    out = pl.pallas_call(
        mlp_kernel,
        out_shape=jax.ShapeDtypeStruct((bp, OUT_FEATURES), jnp.float32),
        grid=grid,
        in_specs=[
            pl.BlockSpec((tb, IN_FEATURES), lambda i: (i, 0)),  # x: tiled along batch
            resident(w1), resident(b1),
            resident(w2), resident(b2),
            resident(w3), resident(b3),
        ],
        out_specs=pl.BlockSpec((tb, OUT_FEATURES), lambda i: (i, 0)),
        compiler_params=pltpu.CompilerParams(
            dimension_semantics=("parallel",),  # batch axis shards across v7x TCs
        ),
    )(x_p, w1, b1, w2, b2, w3, b3)

    return out[:B] if bp != B else out


def init_params(key):
    """Deterministic init matching torch.nn.Linear shapes (stored transposed, f32)."""
    k1, k2, k3, k4, k5, k6 = jax.random.split(key, 6)

    def linear(kw, kb, fan_in, fan_out):
        bound = 1.0 / jnp.sqrt(fan_in)
        w = jax.random.uniform(kw, (fan_in, fan_out), jnp.float32, -bound, bound)
        b = jax.random.uniform(kb, (1, fan_out), jnp.float32, -bound, bound)
        return w, b

    w1, b1 = linear(k1, k2, IN_FEATURES, HIDDEN)
    w2, b2 = linear(k3, k4, HIDDEN, HIDDEN)
    w3, b3 = linear(k5, k6, HIDDEN, OUT_FEATURES)
    return {"w1": w1, "b1": b1, "w2": w2, "b2": b2, "w3": w3, "b3": b3}


def prepare_params(params):
    """One-time kernel-side preprocessing (hoisted out of the forward path):
    w1/biases stay f32 (layer 1 + bias/ReLU run on the VPU), w2/w3 pre-cast to
    bf16 for the MXU."""
    return {
        "w1": params["w1"].astype(jnp.float32),
        "b1": params["b1"].astype(jnp.float32),
        "w2": params["w2"].astype(jnp.bfloat16),
        "b2": params["b2"].astype(jnp.float32),
        "w3": params["w3"].astype(jnp.bfloat16),
        "b3": params["b3"].astype(jnp.float32),
    }


def reference_forward_f32(x, p):
    h = jnp.maximum(x @ p["w1"] + p["b1"], 0.0)
    h = jnp.maximum(h @ p["w2"] + p["b2"], 0.0)
    return h @ p["w3"] + p["b3"]


def reference_forward_mixed(x, p):
    # Emulates the kernel: layer 1 in f32, layers 2/3 with bf16 inputs, f32 accum.
    bf = lambda a: a.astype(jnp.bfloat16)
    h = jnp.maximum(x @ p["w1"] + p["b1"], 0.0)
    h = jnp.maximum(
        jnp.dot(bf(h), bf(p["w2"]), preferred_element_type=jnp.float32) + p["b2"], 0.0)
    return jnp.dot(bf(h), bf(p["w3"]), preferred_element_type=jnp.float32) + p["b3"]


if __name__ == "__main__":
    key = jax.random.PRNGKey(0)
    kx, kx2, kp = jax.random.split(key, 3)
    params = init_params(kp)
    kparams = prepare_params(params)

    # Small aligned batch.
    batch = 8
    x = jax.random.normal(kx, (batch, IN_FEATURES), dtype=jnp.float32)
    out = jax.block_until_ready(mlp_forward(x, kparams))
    assert out.shape == (batch, OUT_FEATURES)
    assert jnp.allclose(out, reference_forward_mixed(x, params), atol=5e-3, rtol=5e-3)
    assert jnp.allclose(out, reference_forward_f32(x, params), atol=5e-2, rtol=5e-2)

    # Ragged batch (exercises the tail-padding path and a 2-step grid).
    batch2 = 37
    x2 = jax.random.normal(kx2, (batch2, IN_FEATURES), dtype=jnp.float32)
    out2 = jax.block_until_ready(mlp_forward(x2, kparams))
    assert out2.shape == (batch2, OUT_FEATURES)
    assert jnp.allclose(out2, reference_forward_mixed(x2, params), atol=5e-3, rtol=5e-3)

    print("KERNEL_OK")
</pallas_src>

<mosaic_0001>
module attributes {stable_mosaic.version = 11 : i64} {
  func.func @mlp_kernel(%arg0: i32, %arg1: memref<8x3xf32, #tpu.memory_space<vmem>>, %arg2: memref<3x128xf32, #tpu.memory_space<vmem>>, %arg3: memref<1x128xf32, #tpu.memory_space<vmem>>, %arg4: memref<128x128xbf16, #tpu.memory_space<vmem>>, %arg5: memref<1x128xf32, #tpu.memory_space<vmem>>, %arg6: memref<128x2xbf16, #tpu.memory_space<vmem>>, %arg7: memref<1x2xf32, #tpu.memory_space<vmem>>, %arg8: memref<8x2xf32, #tpu.memory_space<vmem>>) attributes {dimension_semantics = [#tpu.dimension_semantics<parallel>], iteration_bounds = array<i64: 1>, scalar_prefetch = 0 : i64, scratch_operands = 0 : i64, tpu.core_type = #tpu.core_type<tc>, window_params = [{transform_indices = @transform_0, window_bounds = array<i64: 8, 3>}, {pipeline_mode = #tpu.pipeline_mode<synchronous>, transform_indices = @transform_1, window_bounds = array<i64: 3, 128>}, {pipeline_mode = #tpu.pipeline_mode<synchronous>, transform_indices = @transform_2, window_bounds = array<i64: 1, 128>}, {pipeline_mode = #tpu.pipeline_mode<synchronous>, transform_indices = @transform_3, window_bounds = array<i64: 128, 128>}, {pipeline_mode = #tpu.pipeline_mode<synchronous>, transform_indices = @transform_4, window_bounds = array<i64: 1, 128>}, {pipeline_mode = #tpu.pipeline_mode<synchronous>, transform_indices = @transform_5, window_bounds = array<i64: 128, 2>}, {pipeline_mode = #tpu.pipeline_mode<synchronous>, transform_indices = @transform_6, window_bounds = array<i64: 1, 2>}, {transform_indices = @transform_7, window_bounds = array<i64: 8, 2>}]} {
    %c0 = arith.constant 0 : index
    %c0_0 = arith.constant 0 : index
    %0 = vector.load %arg1[%c0, %c0_0] : memref<8x3xf32, #tpu.memory_space<vmem>>, vector<8x3xf32>
    %c0_1 = arith.constant 0 : index
    %c0_2 = arith.constant 0 : index
    %1 = vector.load %arg2[%c0_1, %c0_2] : memref<3x128xf32, #tpu.memory_space<vmem>>, vector<3x128xf32>
    %2 = vector.extract_strided_slice %0 {offsets = [0, 0], sizes = [8, 1], strides = [1, 1]} : vector<8x3xf32> to vector<8x1xf32>
    %3 = vector.extract_strided_slice %1 {offsets = [0, 0], sizes = [1, 128], strides = [1, 1]} : vector<3x128xf32> to vector<1x128xf32>
    %4 = vector.broadcast %2 : vector<8x1xf32> to vector<8x128xf32>
    %5 = vector.broadcast %3 : vector<1x128xf32> to vector<8x128xf32>
    %6 = arith.mulf %4, %5 : vector<8x128xf32>
    %7 = vector.extract_strided_slice %0 {offsets = [0, 1], sizes = [8, 1], strides = [1, 1]} : vector<8x3xf32> to vector<8x1xf32>
    %8 = vector.extract_strided_slice %1 {offsets = [1, 0], sizes = [1, 128], strides = [1, 1]} : vector<3x128xf32> to vector<1x128xf32>
    %9 = vector.broadcast %7 : vector<8x1xf32> to vector<8x128xf32>
    %10 = vector.broadcast %8 : vector<1x128xf32> to vector<8x128xf32>
    %11 = arith.mulf %9, %10 : vector<8x128xf32>
    %12 = arith.addf %6, %11 : vector<8x128xf32>
    %13 = vector.extract_strided_slice %0 {offsets = [0, 2], sizes = [8, 1], strides = [1, 1]} : vector<8x3xf32> to vector<8x1xf32>
    %14 = vector.extract_strided_slice %1 {offsets = [2, 0], sizes = [1, 128], strides = [1, 1]} : vector<3x128xf32> to vector<1x128xf32>
    %15 = vector.broadcast %13 : vector<8x1xf32> to vector<8x128xf32>
    %16 = vector.broadcast %14 : vector<1x128xf32> to vector<8x128xf32>
    %17 = arith.mulf %15, %16 : vector<8x128xf32>
    %18 = arith.addf %12, %17 : vector<8x128xf32>
    %c0_3 = arith.constant 0 : index
    %c0_4 = arith.constant 0 : index
    %19 = vector.load %arg3[%c0_3, %c0_4] : memref<1x128xf32, #tpu.memory_space<vmem>>, vector<1x128xf32>
    %20 = vector.broadcast %19 : vector<1x128xf32> to vector<8x128xf32>
    %21 = arith.addf %18, %20 : vector<8x128xf32>
    %cst = arith.constant 0.000000e+00 : f32
    %22 = vector.broadcast %cst : f32 to vector<8x128xf32>
    %23 = arith.maximumf %21, %22 : vector<8x128xf32>
    %24 = arith.truncf %23 : vector<8x128xf32> to vector<8x128xbf16>
    %c0_5 = arith.constant 0 : index
    %c0_6 = arith.constant 0 : index
    %25 = vector.load %arg4[%c0_5, %c0_6] : memref<128x128xbf16, #tpu.memory_space<vmem>>, vector<128x128xbf16>
    %cst_7 = arith.constant dense<0.000000e+00> : vector<8x128xf32>
    %26 = tpu.matmul %24, %25, %cst_7 {dimension_numbers = #tpu.dot_dimension_numbers<[1], [0], [0], [1], [0, 0, 1, 1], [], []>} : vector<8x128xbf16>, vector<128x128xbf16>, vector<8x128xf32> -> vector<8x128xf32>
    %c0_8 = arith.constant 0 : index
    %c0_9 = arith.constant 0 : index
    %27 = vector.load %arg5[%c0_8, %c0_9] : memref<1x128xf32, #tpu.memory_space<vmem>>, vector<1x128xf32>
    %28 = vector.broadcast %27 : vector<1x128xf32> to vector<8x128xf32>
    %29 = arith.addf %26, %28 : vector<8x128xf32>
    %cst_10 = arith.constant 0.000000e+00 : f32
    %30 = vector.broadcast %cst_10 : f32 to vector<8x128xf32>
    %31 = arith.maximumf %29, %30 : vector<8x128xf32>
    %32 = arith.truncf %31 : vector<8x128xf32> to vector<8x128xbf16>
    %c0_11 = arith.constant 0 : index
    %c0_12 = arith.constant 0 : index
    %33 = vector.load %arg6[%c0_11, %c0_12] : memref<128x2xbf16, #tpu.memory_space<vmem>>, vector<128x2xbf16>
    %cst_13 = arith.constant dense<0.000000e+00> : vector<8x2xf32>
    %34 = tpu.matmul %32, %33, %cst_13 {dimension_numbers = #tpu.dot_dimension_numbers<[1], [0], [0], [1], [0, 0, 1, 1], [], []>} : vector<8x128xbf16>, vector<128x2xbf16>, vector<8x2xf32> -> vector<8x2xf32>
    %c0_14 = arith.constant 0 : index
    %c0_15 = arith.constant 0 : index
    %35 = vector.load %arg7[%c0_14, %c0_15] : memref<1x2xf32, #tpu.memory_space<vmem>>, vector<1x2xf32>
    %36 = vector.broadcast %35 : vector<1x2xf32> to vector<8x2xf32>
    %37 = arith.addf %34, %36 : vector<8x2xf32>
    %c0_16 = arith.constant 0 : index
    %c0_17 = arith.constant 0 : index
    %38 = vector.load %arg8[%c0_16, %c0_17] : memref<8x2xf32, #tpu.memory_space<vmem>>, vector<8x2xf32>
    tpu.vector_store %arg8[%c0_16, %c0_17], %37 {strides = array<i32>} : memref<8x2xf32, #tpu.memory_space<vmem>>, vector<8x2xf32>,
    return
  }
  func.func @transform_0(%arg0: i32) -> (i32, i32) {
    %c0_i32 = arith.constant 0 : i32
    %c0_i32_0 = arith.constant 0 : i32
    return %arg0, %c0_i32 : i32, i32
  }
  func.func @transform_1(%arg0: i32) -> (i32, i32) {
    %c0_i32 = arith.constant 0 : i32
    %c0_i32_0 = arith.constant 0 : i32
    %c0_i32_1 = arith.constant 0 : i32
    return %c0_i32, %c0_i32_0 : i32, i32
  }
  func.func @transform_2(%arg0: i32) -> (i32, i32) {
    %c0_i32 = arith.constant 0 : i32
    %c0_i32_0 = arith.constant 0 : i32
    %c0_i32_1 = arith.constant 0 : i32
    return %c0_i32, %c0_i32_0 : i32, i32
  }
  func.func @transform_3(%arg0: i32) -> (i32, i32) {
    %c0_i32 = arith.constant 0 : i32
    %c0_i32_0 = arith.constant 0 : i32
    %c0_i32_1 = arith.constant 0 : i32
    return %c0_i32, %c0_i32_0 : i32, i32
  }
  func.func @transform_4(%arg0: i32) -> (i32, i32) {
    %c0_i32 = arith.constant 0 : i32
    %c0_i32_0 = arith.constant 0 : i32
    %c0_i32_1 = arith.constant 0 : i32
    return %c0_i32, %c0_i32_0 : i32, i32
  }
  func.func @transform_5(%arg0: i32) -> (i32, i32) {
    %c0_i32 = arith.constant 0 : i32
    %c0_i32_0 = arith.constant 0 : i32
    %c0_i32_1 = arith.constant 0 : i32
    return %c0_i32, %c0_i32_0 : i32, i32
  }
  func.func @transform_6(%arg0: i32) -> (i32, i32) {
    %c0_i32 = arith.constant 0 : i32
    %c0_i32_0 = arith.constant 0 : i32
    %c0_i32_1 = arith.constant 0 : i32
    return %c0_i32, %c0_i32_0 : i32, i32
  }
  func.func @transform_7(%arg0: i32) -> (i32, i32) {
    %c0_i32 = arith.constant 0 : i32
    %c0_i32_0 = arith.constant 0 : i32
    return %arg0, %c0_i32 : i32, i32
  }
}

</mosaic_0001>

<bundles_post_ra>
// kernel: mlp_forward.1
= control target key start
LH: loop header
LB: loop body
LE: loop exit
PB: predicated region body
PF: predicated region fallthrough
CT: control target
= control target key end

     0   :  { %v401_v0 = vmov 0   ;;  %v402_v2 = vmov 2   ;;  %v403_v4 = vmov 0.0   ;;  %v404_v6 = vmov 1   ;;  %s530_s0 = inlined_call_operand.vmem [shape: f32[8,3], index: 0, kind: input, shape index: {}]   ;;  %s531_s3 = inlined_call_operand.vmem [shape: bf16[128,128], index: 3, kind: input, shape index: {}]   ;;  %s532_s5 = inlined_call_operand.vmem [shape: bf16[128,2], index: 5, kind: input, shape index: {}]   ;;  %s533_s1 = inlined_call_operand.vmem [shape: f32[3,128], index: 1, kind: input, shape index: {}]   ;;  %s534_s2 = inlined_call_operand.vmem [shape: f32[1,128], index: 2, kind: input, shape index: {}]   ;;  %s535_s4 = inlined_call_operand.vmem [shape: f32[1,128], index: 4, kind: input, shape index: {}]   ;;  %s536_s6 = inlined_call_operand.vmem [shape: f32[1,2], index: 6, kind: input, shape index: {}]   ;;  %s537_s7 = inlined_call_operand.vmem [shape: f32[8,2], index: 7, kind: output, shape index: {}]  }
   0x1   :  { %381 = vset.pattern.permute.xlu0 %v401_v0  ;;  %v27_v1 = vld [vmem:[%s530_s0] sm:$0xff]  ;;  %383 = vset.pattern.permute.xlu1 %v402_v2  ;;  %v386_v5 = vld [vmem:[%s531_s3 + $0x8] sm:$0xff]   ;;  %v387_v7 = vld [vmem:[%s531_s3 + $0x10] sm:$0xff]   ;;  %vm405_vm0 = vmmov 0   ;;  %v34_v19 = vlaneseq  ;;  %vm293_vm1 = vcmask 15360  }
   0x2   :  { %31 = vperm.xlu0 %381, %v27_v1   ;;  %50 = vperm.xlu1 %383, %v27_v1   ;;  %v385_v3 = vld [vmem:[%s531_s3] sm:$0xff]   ;;  %v388_v8 = vld [vmem:[%s531_s3 + $0x18] sm:$0xff]   ;;  %v390_v10 = vld [vmem:[%s531_s3 + $0x28] sm:$0xff]  }
   0x3   :  { %336 = vmatprep.subr.bf16.mxu0 %v403_v4  ;;  %356 = vmatprep.subr.bf16.mxu1 %v403_v4  ;;  %v389_v9 = vld [vmem:[%s531_s3 + $0x20] sm:$0xff]   ;;  %v394_v12 = vld [vmem:[%s532_s5 + $0x8] sm:$0xff]   ;;  %v391_v13 = vld [vmem:[%s531_s3 + $0x30] sm:$0xff]   ;;  %v35_v20 = vshrl.u32 %v34_v19, 7 }
   0x4   :  { %337 = vmatpush3.bf16.msra.mxu0 %v385_v3  ;;  %352 = vmatprep.mubr.msk.bf16.mxu0 %vm405_vm0, %v403_v4  ;;  %v393_v11 = vld [vmem:[%s532_s5] sm:$0xff]   ;;  %v395_v14 = vld [vmem:[%s532_s5 + $0x10] sm:$0xff]   ;;  %v392_v15 = vld [vmem:[%s531_s3 + $0x38] sm:$0xff]  }
   0x5   :  { %338 = vmatprep.subr.bf16.mxu0 %v403_v4  ;;  %372 = vmatprep.mubr.msk.bf16.mxu1 %vm405_vm0, %v403_v4  ;;  %v396_v16 = vld [vmem:[%s532_s5 + $0x18] sm:$0xff]   ;;  %v397_v17 = vld [vmem:[%s532_s5 + $0x20] sm:$0xff]   ;;  %v398_v18 = vld [vmem:[%s532_s5 + $0x28] sm:$0xff]   ;;  %v36_v21 = vsub.s32 0, %v35_v20  ;;  %v45_v22 = vsub.s32 1, %v35_v20  ;;  %v55_v23 = vsub.s32 2, %v35_v20 }
   0x6   :  { %382 = vset.pattern.permute.xlu0 %v404_v6  ;;  %357 = vmatpush3.bf16.msra.mxu1 %v393_v11  ;;  %v28_v24 = vld [vmem:[%s533_s1] sm:$0x7]  ;;  %v399_v40 = vld [vmem:[%s532_s5 + $0x30] sm:$0xff]   ;;  %v400_v41 = vld [vmem:[%s532_s5 + $0x38] sm:$0xff]  }
   0x7   :  { %40 = vperm.xlu0 %382, %v27_v1   ;;  %358 = vmatprep.subr.bf16.mxu1 %v403_v4  ;;  %v37_v26 = vrot.slane %v28_v24, %v36_v21  ;;  %v46_v27 = vrot.slane %v28_v24, %v45_v22  ;;  %v56_v28 = vrot.slane %v28_v24, %v55_v23  ;;  %v299_v35 = vld [vmem:[%s534_s2] ss:$0 sm:$0xff] }
   0x8   :  { %339 = vmatpush3.bf16.msra.mxu0 %v386_v5  ;;  %v300_v42 = vld [vmem:[%s535_s4] ss:$0 sm:$0xff] }
   0x9   :  { %340 = vmatprep.subr.bf16.mxu0 %v403_v4  ;;  %v309_v50 = vld [vmem:[%s536_s6] ss:$0 sm:$0xff] }
   0xa   :  { %359 = vmatpush3.bf16.msra.mxu1 %v394_v12 }
   0xb   :  { %384 = vset.pattern.permute.xlu0 %v402_v2  ;;  %360 = vmatprep.subr.bf16.mxu1 %v403_v4 }
   0xc   :  { %341 = vmatpush3.bf16.msra.mxu0 %v387_v7 }
   0xd   :  { %342 = vmatprep.subr.bf16.mxu0 %v403_v4 }
   0xe   :  { %361 = vmatpush3.bf16.msra.mxu1 %v395_v14 }
   0xf   :  { %362 = vmatprep.subr.bf16.mxu1 %v403_v4 }
  0x10   :  { %343 = vmatpush3.bf16.msra.mxu0 %v388_v8 }
  0x11   :  { %344 = vmatprep.subr.bf16.mxu0 %v403_v4 }
  0x12   :  { %363 = vmatpush3.bf16.msra.mxu1 %v396_v16 }
  0x13   :  { %364 = vmatprep.subr.bf16.mxu1 %v403_v4 }
  0x14   :  { %345 = vmatpush3.bf16.msra.mxu0 %v389_v9 }
  0x15   :  { %346 = vmatprep.subr.bf16.mxu0 %v403_v4 }
  0x16   :  { %365 = vmatpush3.bf16.msra.mxu1 %v397_v17 }
  0x17   :  { %366 = vmatprep.subr.bf16.mxu1 %v403_v4 }
  0x18   :  { %347 = vmatpush3.bf16.msra.mxu0 %v390_v10 }
  0x19   :  { %348 = vmatprep.subr.bf16.mxu0 %v403_v4 }
  0x1a   :  { %367 = vmatpush3.bf16.msra.mxu1 %v398_v18 }
  0x1b   :  { %368 = vmatprep.subr.bf16.mxu1 %v403_v4 }
  0x1c   :  { %349 = vmatpush3.bf16.msra.mxu0 %v391_v13 }
  0x1d   :  { %350 = vmatprep.subr.bf16.mxu0 %v403_v4 }
  0x1e   :  { %369 = vmatpush3.bf16.msra.mxu1 %v399_v40 }
  0x1f   :  { %370 = vmatprep.subr.bf16.mxu1 %v403_v4 }
  0x20   :  { %351 = vmatpush3.bf16.msra.mxu0 %v392_v15 }
  0x22   :  { %371 = vmatpush3.bf16.msra.mxu1 %v400_v41 }
  0x81   :  { %v32_v25 = vpop.permute.xlu0 %31  ;;  %v51_v29 = vpop.permute.xlu1 %50 }
  0x82   :  { %v38_v31 = vmul.f32 %v37_v26, %v32_v25  ;;  %v57_v33 = vmul.f32 %v56_v28, %v51_v29 }
  0x86   :  { %v41_v30 = vpop.permute.xlu0 %40 }
  0x87   :  { %v47_v32 = vmul.f32 %v46_v27, %v41_v30 }
  0x89   :  { %v48_v34 = vadd.f32 %v47_v32, %v38_v31 }
  0x8b   :  { %v58_v36 = vadd.f32 %v57_v33, %v48_v34 }
  0x8d   :  { %v66_v37 = vadd.f32 %v299_v35, %v58_v36 }
  0x8f   :  { %v67_v38 = vmax.f32 %v66_v37, 0.0 }
  0x91   :  { %v68_v39 = vpack.c.bf16 %v67_v38, %v67_v38 }
  0x93   :  { %353 = vmatmul.mubr.bf16.vlgmr.msra.gmra.mrb[0].mxu0 %v68_v39 }
 0x166   :  { %v174_v43 = vpop.f32.mrb[0].mxu0 }
 0x167   :  { %v175_v44 = vadd.f32 %v300_v42, %v174_v43  ;;  %v354_v45 = vpop.f32.mrb[1].mxu0 }
 0x168   :  { %v177_v46 = vpop.f32.mrb[2].mxu0 }
 0x169   :  { %v180_v47 = vmax.f32 %v175_v44, 0.0  ;;  %v355_v48 = vpop.f32.mrb[3].mxu0 }
 0x16b   :  { %v181_v49 = vpack.c.bf16 %v180_v47, %v180_v47 }
 0x16d   :  { %373 = vmatmul.mubr.bf16.vlgmr.msra.gmra.mrb[0].mxu1 %v181_v49 }
 0x240   :  { %v287_v51 = vpop.f32.mrb[0].mxu1 }
 0x241   :  { %v288_v52 = vadd.f32 %v309_v50, %v287_v51  ;;  %v374_v53 = vpop.f32.mrb[1].mxu1 }
 0x242   :  { %v290_v54 = vpop.f32.mrb[2].mxu1 }
 0x243   :  { %294 = vst.msk [vmem:[%s537_s7] sm:$0xff] %vm293_vm1, %v288_v52  ;;  %v375_v55 = vpop.f32.mrb[3].mxu1 }

</bundles_post_ra>
